<compile_context>
chip_gen: v5e
topology: v5e:2x2
jax: 0.10.0
libtpu: 0.0.40
codegen_flags: <defaults>
</compile_context>

<pallas_src>
import functools

import jax
import jax.numpy as jnp
import numpy as np
from jax.experimental import pallas as pl
from jax.experimental.pallas import tpu as pltpu

# Tile bounds (multiples of 128).  Shared by prepare_params() and fused_linear()
# so padded shapes and kernel tiling always agree.
TK_MAX = 2048   # K (reduction) tile upper bound
TN_MAX = 2048   # N (output-feature) tile upper bound


def _round_up(v, m):
    return (v + m - 1) // m * m


def _pick_tile(dim, max_tile, *, align=128, min_tiles=1):
    """Largest multiple of `align` that divides `dim`, is <= max_tile, and (when the
    dimension allows it) yields at least `min_tiles` tiles.  `dim` must be a
    multiple of `align`."""
    cap = max(align, min(dim, max_tile) // align * align)
    if min_tiles > 1:
        cap = min(cap, max(align, dim // (min_tiles * align) * align))
    t = cap
    while dim % t:
        t -= align
    return t


# ----------------------------------------------------------------------------
# Pallas kernel:  out = [ relu(x@W + b)*scale + shift ] (+ res)   or   x@W + b
# Grid = (N_tiles [parallel], K_tiles [arbitrary]); f32 accumulation happens in a
# VMEM scratch block that is resident across the K axis; the (bf16 or f32) output
# block is written once at the last K step.
# ----------------------------------------------------------------------------
def _fused_linear_kernel(*refs, relu_bn: bool, has_res: bool):
    x_ref, w_ref, b_ref = refs[0], refs[1], refs[2]
    idx = 3
    if relu_bn:
        scale_ref, shift_ref = refs[idx], refs[idx + 1]
        idx += 2
    if has_res:
        res_ref = refs[idx]
        idx += 1
    o_ref, acc_ref = refs[idx], refs[idx + 1]

    k = pl.program_id(1)

    @pl.when(k == 0)
    def _init():
        acc_ref[...] = jnp.zeros_like(acc_ref)

    # bf16 x bf16 -> f32 accumulation on the MXU.
    acc_ref[...] += jnp.dot(x_ref[...], w_ref[...],
                            preferred_element_type=jnp.float32)

    @pl.when(k == pl.num_programs(1) - 1)
    def _finalize():
        y = acc_ref[...] + b_ref[...]
        if relu_bn:
            y = jnp.maximum(y, 0.0)                    # ReLU
            y = y * scale_ref[...] + shift_ref[...]    # folded BatchNorm1d (eval)
        if has_res:
            y = y + res_ref[...].astype(jnp.float32)   # residual add
        o_ref[...] = y.astype(o_ref.dtype)


def fused_linear(x, w, b, scale=None, shift=None, res=None, *,
                 relu_bn: bool, out_dtype=jnp.bfloat16):
    """out = x @ w + b, optional ReLU + folded-BN affine, optional residual add.

    All operands must already be tile-aligned (see prepare_params):
      x: (Mp, Kp) bf16   w: (Kp, Np) bf16   b/scale/shift: (1, Np) f32
      res: (Mp, Np) bf16, Mp % 8 == 0, Kp % 128 == 0, Np % 128 == 0.
    No padding, casting or copying happens here (per-forward hot path).
    """
    if relu_bn and (scale is None or shift is None):
        raise ValueError("relu_bn=True requires scale and shift")
    Mp, Kp = x.shape
    Kw, Np = w.shape
    if Kw != Kp:
        raise ValueError(f"inner-dim mismatch: x has {Kp}, w has {Kw}")
    if Mp % 8 or Kp % 128 or Np % 128:
        raise ValueError("operands must be pre-padded (use prepare_params / the "
                         "forward wrapper)")
    has_res = res is not None

    tk = _pick_tile(Kp, TK_MAX)                    # large K tiles: few grid steps
    tn = _pick_tile(Np, TN_MAX, min_tiles=2)       # >=2 N tiles -> both v7x TCs stream
    grid = (Np // tn, Kp // tk)

    inputs = [x, w, b]
    in_specs = [
        pl.BlockSpec((Mp, tk), lambda j, k: (0, k)),   # activations (bf16)
        pl.BlockSpec((tk, tn), lambda j, k: (k, j)),   # weights: dominant HBM stream
        pl.BlockSpec((1, tn), lambda j, k: (0, j)),    # bias (f32 row)
    ]
    if relu_bn:
        inputs += [scale, shift]
        in_specs += [pl.BlockSpec((1, tn), lambda j, k: (0, j)),
                     pl.BlockSpec((1, tn), lambda j, k: (0, j))]
    if has_res:
        inputs.append(res)
        in_specs.append(pl.BlockSpec((Mp, tn), lambda j, k: (0, j)))

    act_bytes = jnp.dtype(x.dtype).itemsize
    w_bytes = jnp.dtype(w.dtype).itemsize
    out_bytes = jnp.dtype(out_dtype).itemsize

    # VMEM: double-buffered input blocks + output block + f32 accumulator scratch.
    vmem_est = (2 * Mp * tk * act_bytes + 2 * tk * tn * w_bytes
                + (2 * Mp * tn * act_bytes if has_res else 0)
                + 2 * Mp * tn * out_bytes + Mp * tn * 4 + 6 * tn * 4)
    # Cap at 48 MiB to keep headroom under v7x's 64 MiB VMEM (feedback #3).
    vmem_limit = int(min(max(2 * vmem_est, 16 * 1024 * 1024), 48 * 1024 * 1024))

    cost = pl.CostEstimate(
        flops=2 * Mp * Kp * Np,
        transcendentals=0,
        bytes_accessed=(grid[0] * Mp * Kp * act_bytes    # x is re-streamed per N tile
                        + Kp * Np * w_bytes
                        + Mp * Np * out_bytes
                        + (Mp * Np * act_bytes if has_res else 0)
                        + (3 if relu_bn else 1) * Np * 4))

    kernel = functools.partial(_fused_linear_kernel, relu_bn=relu_bn, has_res=has_res)
    return pl.pallas_call(
        kernel,
        out_shape=jax.ShapeDtypeStruct((Mp, Np), out_dtype),
        grid=grid,
        in_specs=in_specs,
        out_specs=pl.BlockSpec((Mp, tn), lambda j, k: (0, j)),
        scratch_shapes=[pltpu.VMEM((Mp, tn), jnp.float32)],
        compiler_params=pltpu.CompilerParams(
            dimension_semantics=("parallel", "arbitrary"),
            vmem_limit_bytes=vmem_limit),
        cost_estimate=cost,
    )(*inputs)


# ----------------------------------------------------------------------------
# Parameters: "PyTorch-like" raw params, then a one-time prepare (fold/cast/pad)
# ----------------------------------------------------------------------------
def make_params(key, in_dim, h, out_dim):
    """Deterministic synthetic parameters in the module's layout (weights stored
    pre-transposed as [in_features, out_features], f32)."""
    def linear(k, fan_in, fan_out):
        kw, kb = jax.random.split(k)
        bound = (1.0 / fan_in) ** 0.5
        return {"w": jax.random.uniform(kw, (fan_in, fan_out), jnp.float32, -bound, bound),
                "b": jax.random.uniform(kb, (fan_out,), jnp.float32, -bound, bound)}

    def bn(k, n):
        k1, k2, k3, k4 = jax.random.split(k, 4)
        return {"gamma": 1.0 + 0.1 * jax.random.normal(k1, (n,), jnp.float32),
                "beta": 0.1 * jax.random.normal(k2, (n,), jnp.float32),
                "mean": 0.1 * jax.random.normal(k3, (n,), jnp.float32),
                "var": 1.0 + 0.1 * jax.random.uniform(k4, (n,), jnp.float32)}

    keys = jax.random.split(key, 11)
    return {
        "conv": {"lin": linear(keys[0], in_dim, h), "bn": bn(keys[1], h)},
        "blocks": [{"lin": linear(keys[2 + 2 * i], h, h), "bn": bn(keys[3 + 2 * i], h)}
                   for i in range(4)],
        "lin1": linear(keys[10], h, out_dim),
    }


def _fold_bn(bn, eps=1e-5):
    scale = bn["gamma"] * jax.lax.rsqrt(bn["var"] + eps)
    shift = bn["beta"] - bn["mean"] * scale
    return scale, shift


def _pad2(a, rows, cols):
    return jnp.pad(a, ((0, rows - a.shape[0]), (0, cols - a.shape[1])))


def _pad_row(v, cols):
    v = jnp.reshape(v, (1, -1)).astype(jnp.float32)
    return jnp.pad(v, ((0, 0), (0, cols - v.shape[1])))


def prepare_params(params, *, w_dtype=jnp.bfloat16):
    """ONE-TIME prep (call outside the jitted forward): fold eval-mode BatchNorm
    into per-feature scale/shift, cast weights to bf16 and zero-pad everything to
    tile-aligned shapes.  Padding is numerically exact (zeros contribute 0)."""
    in_dim, h = params["conv"]["lin"]["w"].shape
    out_dim = params["lin1"]["w"].shape[1]

    tk_in = min(TK_MAX, _round_up(in_dim, 128))
    Kp_in = _round_up(in_dim, tk_in)      # conv reduction dim padded to its K tile
    Hp = _round_up(h, 128)
    Op = _round_up(out_dim, 128)

    def prep_block(lin, bn, k_pad, n_pad):
        s, t = _fold_bn(bn)
        return {"w": _pad2(lin["w"].astype(w_dtype), k_pad, n_pad),
                "b": _pad_row(lin["b"], n_pad),
                "s": _pad_row(s, n_pad),
                "t": _pad_row(t, n_pad)}

    # TODO(synk): optional fp8 (v7x) / int8 (v5e/v6e) weight quantization with
    #             per-channel scales folded into s/t would halve weight HBM traffic.
    return {
        "conv": prep_block(params["conv"]["lin"], params["conv"]["bn"], Kp_in, Hp),
        "blocks": [prep_block(bk["lin"], bk["bn"], Hp, Hp) for bk in params["blocks"]],
        "lin1": {"w": _pad2(params["lin1"]["w"].astype(w_dtype), Hp, Op),
                 "b": _pad_row(params["lin1"]["b"], Op)},
    }


# ----------------------------------------------------------------------------
# Forward pass (hot path: only the pallas_calls plus one tiny input pad/cast)
# ----------------------------------------------------------------------------
def brain_network_forward(prep, x, *, out_dim):
    M, in_feats = x.shape
    Kp_in = prep["conv"]["w"].shape[0]
    if in_feats > Kp_in:
        raise ValueError(f"input features {in_feats} exceed prepared width {Kp_in}")
    Mp = _round_up(max(M, 1), 8)

    # Activations are streamed as bf16 throughout; pad rows/cols once here.
    xb = jnp.pad(x.astype(jnp.bfloat16), ((0, Mp - M), (0, Kp_in - in_feats)))

    # conv block: Linear -> ReLU -> BN(eval, folded) -> Dropout (identity in eval)
    c = prep["conv"]
    y = fused_linear(xb, c["w"], c["b"], c["s"], c["t"], relu_bn=True)

    # 4 residual blocks: Linear -> ReLU -> BN -> Dropout, then x += residual
    for blk in prep["blocks"]:
        y = fused_linear(y, blk["w"], blk["b"], blk["s"], blk["t"], res=y, relu_bn=True)

    # x.reshape(len(x), -1) is the identity for 2-D activations, then lin1.
    out = fused_linear(y, prep["lin1"]["w"], prep["lin1"]["b"],
                       relu_bn=False, out_dtype=jnp.float32)
    return out[:M, :out_dim]


def brain_network_reference(params, x):
    """Pure-JAX eval-mode reference with the same bf16 weight/activation
    quantization as the kernels (f32 accumulation).  NOTE: vs a pure-f32 PyTorch
    baseline this is an explicit accuracy decision (bf16 streaming)."""
    def lin(v, w, b):
        return jnp.dot(v.astype(jnp.bfloat16), w.astype(jnp.bfloat16),
                       preferred_element_type=jnp.float32) + b.astype(jnp.float32)

    s, t = _fold_bn(params["conv"]["bn"])
    y = jnp.maximum(lin(x, params["conv"]["lin"]["w"], params["conv"]["lin"]["b"]), 0.0)
    y = (y * s + t).astype(jnp.bfloat16).astype(jnp.float32)      # stored as bf16
    for blk in params["blocks"]:
        s, t = _fold_bn(blk["bn"])
        z = jnp.maximum(lin(y, blk["lin"]["w"], blk["lin"]["b"]), 0.0) * s + t
        y = (z + y).astype(jnp.bfloat16).astype(jnp.float32)
    return lin(y, params["lin1"]["w"], params["lin1"]["b"])


if __name__ == "__main__":
    # Small shapes consistent with the module (real model: in_dim=15724, h=4096, out_dim=768).
    bs, in_dim, h, out_dim = 2, 512, 256, 128

    key = jax.random.PRNGKey(0)
    kx, kp = jax.random.split(key)
    x = jax.random.normal(kx, (bs, in_dim), jnp.float32)

    params = make_params(kp, in_dim, h, out_dim)    # raw f32 "PyTorch-like" params
    prep = prepare_params(params)                   # one-time fold/cast/pad, outside jit

    fwd = jax.jit(functools.partial(brain_network_forward, out_dim=out_dim))
    out = jax.block_until_ready(fwd(prep, x))

    ref = brain_network_reference(params, x)
    assert out.shape == (bs, out_dim), out.shape
    np.testing.assert_allclose(np.asarray(out), np.asarray(ref), rtol=1e-2, atol=1e-2)

    print("KERNEL_OK")
</pallas_src>

<mosaic_0001>
module attributes {stable_mosaic.version = 11 : i64} {
  func.func @_fused_linear_kernel(%arg0: i32, %arg1: i32, %arg2: memref<8x256xbf16, #tpu.memory_space<vmem>>, %arg3: memref<256x128xbf16, #tpu.memory_space<vmem>>, %arg4: memref<1x128xf32, #tpu.memory_space<vmem>>, %arg5: memref<1x128xf32, #tpu.memory_space<vmem>>, %arg6: memref<1x128xf32, #tpu.memory_space<vmem>>, %arg7: memref<8x128xbf16, #tpu.memory_space<vmem>>, %arg8: memref<8x128xbf16, #tpu.memory_space<vmem>>, %arg9: memref<8x128xf32, #tpu.memory_space<vmem>>) attributes {dimension_semantics = [#tpu.dimension_semantics<parallel>, #tpu.dimension_semantics<arbitrary>], iteration_bounds = array<i64: 2, 1>, scalar_prefetch = 0 : i64, scratch_operands = 1 : i64, tpu.core_type = #tpu.core_type<tc>, window_params = [{transform_indices = @transform_0, window_bounds = array<i64: 8, 256>}, {transform_indices = @transform_1, window_bounds = array<i64: 256, 128>}, {transform_indices = @transform_2, window_bounds = array<i64: 1, 128>}, {transform_indices = @transform_3, window_bounds = array<i64: 1, 128>}, {transform_indices = @transform_4, window_bounds = array<i64: 1, 128>}, {transform_indices = @transform_5, window_bounds = array<i64: 8, 128>}, {transform_indices = @transform_6, window_bounds = array<i64: 8, 128>}]} {
    %c0_i32 = arith.constant 0 : i32
    %0 = arith.cmpi eq, %arg1, %c0_i32 : i32
    %1 = arith.extui %0 : i1 to i32
    %c0_i32_0 = arith.constant 0 : i32
    %2 = arith.cmpi ne, %1, %c0_i32_0 : i32
    scf.if %2 {
      %cst_10 = arith.constant 0.000000e+00 : f32
      %12 = vector.broadcast %cst_10 : f32 to vector<8x128xf32>
      %c0_11 = arith.constant 0 : index
      %c0_12 = arith.constant 0 : index
      %13 = vector.load %arg9[%c0_11, %c0_12] : memref<8x128xf32, #tpu.memory_space<vmem>>, vector<8x128xf32>
      tpu.vector_store %arg9[%c0_11, %c0_12], %12 {strides = array<i32>} : memref<8x128xf32, #tpu.memory_space<vmem>>, vector<8x128xf32>,
    } else {
    }
    %c0 = arith.constant 0 : index
    %c0_1 = arith.constant 0 : index
    %3 = vector.load %arg9[%c0, %c0_1] : memref<8x128xf32, #tpu.memory_space<vmem>>, vector<8x128xf32>
    %c0_2 = arith.constant 0 : index
    %c0_3 = arith.constant 0 : index
    %4 = vector.load %arg2[%c0_2, %c0_3] : memref<8x256xbf16, #tpu.memory_space<vmem>>, vector<8x256xbf16>
    %c0_4 = arith.constant 0 : index
    %c0_5 = arith.constant 0 : index
    %5 = vector.load %arg3[%c0_4, %c0_5] : memref<256x128xbf16, #tpu.memory_space<vmem>>, vector<256x128xbf16>
    %cst = arith.constant dense<0.000000e+00> : vector<8x128xf32>
    %6 = tpu.matmul %4, %5, %cst {dimension_numbers = #tpu.dot_dimension_numbers<[1], [0], [0], [1], [0, 0, 1, 1], [], []>} : vector<8x256xbf16>, vector<256x128xbf16>, vector<8x128xf32> -> vector<8x128xf32>
    %7 = arith.addf %3, %6 : vector<8x128xf32>
    %c0_6 = arith.constant 0 : index
    %c0_7 = arith.constant 0 : index
    %8 = vector.load %arg9[%c0_6, %c0_7] : memref<8x128xf32, #tpu.memory_space<vmem>>, vector<8x128xf32>
    tpu.vector_store %arg9[%c0_6, %c0_7], %7 {strides = array<i32>} : memref<8x128xf32, #tpu.memory_space<vmem>>, vector<8x128xf32>,
    %c0_i32_8 = arith.constant 0 : i32
    %9 = arith.cmpi eq, %arg1, %c0_i32_8 : i32
    %10 = arith.extui %9 : i1 to i32
    %c0_i32_9 = arith.constant 0 : i32
    %11 = arith.cmpi ne, %10, %c0_i32_9 : i32
    scf.if %11 {
      %c0_10 = arith.constant 0 : index
      %c0_11 = arith.constant 0 : index
      %12 = vector.load %arg9[%c0_10, %c0_11] : memref<8x128xf32, #tpu.memory_space<vmem>>, vector<8x128xf32>
      %c0_12 = arith.constant 0 : index
      %c0_13 = arith.constant 0 : index
      %13 = vector.load %arg4[%c0_12, %c0_13] : memref<1x128xf32, #tpu.memory_space<vmem>>, vector<1x128xf32>
      %14 = vector.broadcast %13 : vector<1x128xf32> to vector<8x128xf32>
      %15 = arith.addf %12, %14 : vector<8x128xf32>
      %cst_14 = arith.constant 0.000000e+00 : f32
      %16 = vector.broadcast %cst_14 : f32 to vector<8x128xf32>
      %17 = arith.maximumf %15, %16 : vector<8x128xf32>
      %c0_15 = arith.constant 0 : index
      %c0_16 = arith.constant 0 : index
      %18 = vector.load %arg5[%c0_15, %c0_16] : memref<1x128xf32, #tpu.memory_space<vmem>>, vector<1x128xf32>
      %19 = vector.broadcast %18 : vector<1x128xf32> to vector<8x128xf32>
      %20 = arith.mulf %17, %19 : vector<8x128xf32>
      %c0_17 = arith.constant 0 : index
      %c0_18 = arith.constant 0 : index
      %21 = vector.load %arg6[%c0_17, %c0_18] : memref<1x128xf32, #tpu.memory_space<vmem>>, vector<1x128xf32>
      %22 = vector.broadcast %21 : vector<1x128xf32> to vector<8x128xf32>
      %23 = arith.addf %20, %22 : vector<8x128xf32>
      %c0_19 = arith.constant 0 : index
      %c0_20 = arith.constant 0 : index
      %24 = vector.load %arg7[%c0_19, %c0_20] : memref<8x128xbf16, #tpu.memory_space<vmem>>, vector<8x128xbf16>
      %25 = arith.extf %24 : vector<8x128xbf16> to vector<8x128xf32>
      %26 = arith.addf %23, %25 : vector<8x128xf32>
      %27 = arith.truncf %26 : vector<8x128xf32> to vector<8x128xbf16>
      %c0_21 = arith.constant 0 : index
      %c0_22 = arith.constant 0 : index
      %28 = vector.load %arg8[%c0_21, %c0_22] : memref<8x128xbf16, #tpu.memory_space<vmem>>, vector<8x128xbf16>
      tpu.vector_store %arg8[%c0_21, %c0_22], %27 {strides = array<i32>} : memref<8x128xbf16, #tpu.memory_space<vmem>>, vector<8x128xbf16>,
    } else {
    }
    return
  }
  func.func @transform_0(%arg0: i32, %arg1: i32) -> (i32, i32) {
    %c0_i32 = arith.constant 0 : i32
    %c0_i32_0 = arith.constant 0 : i32
    return %c0_i32, %arg1 : i32, i32
  }
  func.func @transform_1(%arg0: i32, %arg1: i32) -> (i32, i32) {
    %c0_i32 = arith.constant 0 : i32
    return %arg1, %arg0 : i32, i32
  }
  func.func @transform_2(%arg0: i32, %arg1: i32) -> (i32, i32) {
    %c0_i32 = arith.constant 0 : i32
    %c0_i32_0 = arith.constant 0 : i32
    return %c0_i32, %arg0 : i32, i32
  }
  func.func @transform_3(%arg0: i32, %arg1: i32) -> (i32, i32) {
    %c0_i32 = arith.constant 0 : i32
    %c0_i32_0 = arith.constant 0 : i32
    return %c0_i32, %arg0 : i32, i32
  }
  func.func @transform_4(%arg0: i32, %arg1: i32) -> (i32, i32) {
    %c0_i32 = arith.constant 0 : i32
    %c0_i32_0 = arith.constant 0 : i32
    return %c0_i32, %arg0 : i32, i32
  }
  func.func @transform_5(%arg0: i32, %arg1: i32) -> (i32, i32) {
    %c0_i32 = arith.constant 0 : i32
    %c0_i32_0 = arith.constant 0 : i32
    return %c0_i32, %arg0 : i32, i32
  }
  func.func @transform_6(%arg0: i32, %arg1: i32) -> (i32, i32) {
    %c0_i32 = arith.constant 0 : i32
    %c0_i32_0 = arith.constant 0 : i32
    return %c0_i32, %arg0 : i32, i32
  }
}

module attributes {stable_mosaic.version = 11 : i64} {
  func.func @_fused_linear_kernel(%arg0: i32, %arg1: i32, %arg2: memref<8x512xbf16, #tpu.memory_space<vmem>>, %arg3: memref<512x128xbf16, #tpu.memory_space<vmem>>, %arg4: memref<1x128xf32, #tpu.memory_space<vmem>>, %arg5: memref<1x128xf32, #tpu.memory_space<vmem>>, %arg6: memref<1x128xf32, #tpu.memory_space<vmem>>, %arg7: memref<8x128xbf16, #tpu.memory_space<vmem>>, %arg8: memref<8x128xf32, #tpu.memory_space<vmem>>) attributes {dimension_semantics = [#tpu.dimension_semantics<parallel>, #tpu.dimension_semantics<arbitrary>], iteration_bounds = array<i64: 2, 1>, scalar_prefetch = 0 : i64, scratch_operands = 1 : i64, tpu.core_type = #tpu.core_type<tc>, window_params = [{transform_indices = @transform_0, window_bounds = array<i64: 8, 512>}, {transform_indices = @transform_1, window_bounds = array<i64: 512, 128>}, {transform_indices = @transform_2, window_bounds = array<i64: 1, 128>}, {transform_indices = @transform_3, window_bounds = array<i64: 1, 128>}, {transform_indices = @transform_4, window_bounds = array<i64: 1, 128>}, {transform_indices = @transform_5, window_bounds = array<i64: 8, 128>}]} {
    %c0_i32 = arith.constant 0 : i32
    %0 = arith.cmpi eq, %arg1, %c0_i32 : i32
    %1 = arith.extui %0 : i1 to i32
    %c0_i32_0 = arith.constant 0 : i32
    %2 = arith.cmpi ne, %1, %c0_i32_0 : i32
    scf.if %2 {
      %cst_10 = arith.constant 0.000000e+00 : f32
      %12 = vector.broadcast %cst_10 : f32 to vector<8x128xf32>
      %c0_11 = arith.constant 0 : index
      %c0_12 = arith.constant 0 : index
      %13 = vector.load %arg8[%c0_11, %c0_12] : memref<8x128xf32, #tpu.memory_space<vmem>>, vector<8x128xf32>
      tpu.vector_store %arg8[%c0_11, %c0_12], %12 {strides = array<i32>} : memref<8x128xf32, #tpu.memory_space<vmem>>, vector<8x128xf32>,
    } else {
    }
    %c0 = arith.constant 0 : index
    %c0_1 = arith.constant 0 : index
    %3 = vector.load %arg8[%c0, %c0_1] : memref<8x128xf32, #tpu.memory_space<vmem>>, vector<8x128xf32>
    %c0_2 = arith.constant 0 : index
    %c0_3 = arith.constant 0 : index
    %4 = vector.load %arg2[%c0_2, %c0_3] : memref<8x512xbf16, #tpu.memory_space<vmem>>, vector<8x512xbf16>
    %c0_4 = arith.constant 0 : index
    %c0_5 = arith.constant 0 : index
    %5 = vector.load %arg3[%c0_4, %c0_5] : memref<512x128xbf16, #tpu.memory_space<vmem>>, vector<512x128xbf16>
    %cst = arith.constant dense<0.000000e+00> : vector<8x128xf32>
    %6 = tpu.matmul %4, %5, %cst {dimension_numbers = #tpu.dot_dimension_numbers<[1], [0], [0], [1], [0, 0, 1, 1], [], []>} : vector<8x512xbf16>, vector<512x128xbf16>, vector<8x128xf32> -> vector<8x128xf32>
    %7 = arith.addf %3, %6 : vector<8x128xf32>
    %c0_6 = arith.constant 0 : index
    %c0_7 = arith.constant 0 : index
    %8 = vector.load %arg8[%c0_6, %c0_7] : memref<8x128xf32, #tpu.memory_space<vmem>>, vector<8x128xf32>
    tpu.vector_store %arg8[%c0_6, %c0_7], %7 {strides = array<i32>} : memref<8x128xf32, #tpu.memory_space<vmem>>, vector<8x128xf32>,
    %c0_i32_8 = arith.constant 0 : i32
    %9 = arith.cmpi eq, %arg1, %c0_i32_8 : i32
    %10 = arith.extui %9 : i1 to i32
    %c0_i32_9 = arith.constant 0 : i32
    %11 = arith.cmpi ne, %10, %c0_i32_9 : i32
    scf.if %11 {
      %c0_10 = arith.constant 0 : index
      %c0_11 = arith.constant 0 : index
      %12 = vector.load %arg8[%c0_10, %c0_11] : memref<8x128xf32, #tpu.memory_space<vmem>>, vector<8x128xf32>
      %c0_12 = arith.constant 0 : index
      %c0_13 = arith.constant 0 : index
      %13 = vector.load %arg4[%c0_12, %c0_13] : memref<1x128xf32, #tpu.memory_space<vmem>>, vector<1x128xf32>
      %14 = vector.broadcast %13 : vector<1x128xf32> to vector<8x128xf32>
      %15 = arith.addf %12, %14 : vector<8x128xf32>
      %cst_14 = arith.constant 0.000000e+00 : f32
      %16 = vector.broadcast %cst_14 : f32 to vector<8x128xf32>
      %17 = arith.maximumf %15, %16 : vector<8x128xf32>
      %c0_15 = arith.constant 0 : index
      %c0_16 = arith.constant 0 : index
      %18 = vector.load %arg5[%c0_15, %c0_16] : memref<1x128xf32, #tpu.memory_space<vmem>>, vector<1x128xf32>
      %19 = vector.broadcast %18 : vector<1x128xf32> to vector<8x128xf32>
      %20 = arith.mulf %17, %19 : vector<8x128xf32>
      %c0_17 = arith.constant 0 : index
      %c0_18 = arith.constant 0 : index
      %21 = vector.load %arg6[%c0_17, %c0_18] : memref<1x128xf32, #tpu.memory_space<vmem>>, vector<1x128xf32>
      %22 = vector.broadcast %21 : vector<1x128xf32> to vector<8x128xf32>
      %23 = arith.addf %20, %22 : vector<8x128xf32>
      %24 = arith.truncf %23 : vector<8x128xf32> to vector<8x128xbf16>
      %c0_19 = arith.constant 0 : index
      %c0_20 = arith.constant 0 : index
      %25 = vector.load %arg7[%c0_19, %c0_20] : memref<8x128xbf16, #tpu.memory_space<vmem>>, vector<8x128xbf16>
      tpu.vector_store %arg7[%c0_19, %c0_20], %24 {strides = array<i32>} : memref<8x128xbf16, #tpu.memory_space<vmem>>, vector<8x128xbf16>,
    } else {
    }
    return
  }
  func.func @transform_0(%arg0: i32, %arg1: i32) -> (i32, i32) {
    %c0_i32 = arith.constant 0 : i32
    %c0_i32_0 = arith.constant 0 : i32
    return %c0_i32, %arg1 : i32, i32
  }
  func.func @transform_1(%arg0: i32, %arg1: i32) -> (i32, i32) {
    %c0_i32 = arith.constant 0 : i32
    return %arg1, %arg0 : i32, i32
  }
  func.func @transform_2(%arg0: i32, %arg1: i32) -> (i32, i32) {
    %c0_i32 = arith.constant 0 : i32
    %c0_i32_0 = arith.constant 0 : i32
    return %c0_i32, %arg0 : i32, i32
  }
  func.func @transform_3(%arg0: i32, %arg1: i32) -> (i32, i32) {
    %c0_i32 = arith.constant 0 : i32
    %c0_i32_0 = arith.constant 0 : i32
    return %c0_i32, %arg0 : i32, i32
  }
  func.func @transform_4(%arg0: i32, %arg1: i32) -> (i32, i32) {
    %c0_i32 = arith.constant 0 : i32
    %c0_i32_0 = arith.constant 0 : i32
    return %c0_i32, %arg0 : i32, i32
  }
  func.func @transform_5(%arg0: i32, %arg1: i32) -> (i32, i32) {
    %c0_i32 = arith.constant 0 : i32
    %c0_i32_0 = arith.constant 0 : i32
    return %c0_i32, %arg0 : i32, i32
  }
}

module attributes {stable_mosaic.version = 11 : i64} {
  func.func @_fused_linear_kernel(%arg0: i32, %arg1: i32, %arg2: memref<8x256xbf16, #tpu.memory_space<vmem>>, %arg3: memref<256x128xbf16, #tpu.memory_space<vmem>>, %arg4: memref<1x128xf32, #tpu.memory_space<vmem>>, %arg5: memref<8x128xf32, #tpu.memory_space<vmem>>, %arg6: memref<8x128xf32, #tpu.memory_space<vmem>>) attributes {dimension_semantics = [#tpu.dimension_semantics<parallel>, #tpu.dimension_semantics<arbitrary>], iteration_bounds = array<i64: 1, 1>, scalar_prefetch = 0 : i64, scratch_operands = 1 : i64, tpu.core_type = #tpu.core_type<tc>, window_params = [{transform_indices = @transform_0, window_bounds = array<i64: 8, 256>}, {transform_indices = @transform_1, window_bounds = array<i64: 256, 128>}, {transform_indices = @transform_2, window_bounds = array<i64: 1, 128>}, {transform_indices = @transform_3, window_bounds = array<i64: 8, 128>}]} {
    %c0_i32 = arith.constant 0 : i32
    %0 = arith.cmpi eq, %arg1, %c0_i32 : i32
    %1 = arith.extui %0 : i1 to i32
    %c0_i32_0 = arith.constant 0 : i32
    %2 = arith.cmpi ne, %1, %c0_i32_0 : i32
    scf.if %2 {
      %cst_10 = arith.constant 0.000000e+00 : f32
      %12 = vector.broadcast %cst_10 : f32 to vector<8x128xf32>
      %c0_11 = arith.constant 0 : index
      %c0_12 = arith.constant 0 : index
      %13 = vector.load %arg6[%c0_11, %c0_12] : memref<8x128xf32, #tpu.memory_space<vmem>>, vector<8x128xf32>
      tpu.vector_store %arg6[%c0_11, %c0_12], %12 {strides = array<i32>} : memref<8x128xf32, #tpu.memory_space<vmem>>, vector<8x128xf32>,
    } else {
    }
    %c0 = arith.constant 0 : index
    %c0_1 = arith.constant 0 : index
    %3 = vector.load %arg6[%c0, %c0_1] : memref<8x128xf32, #tpu.memory_space<vmem>>, vector<8x128xf32>
    %c0_2 = arith.constant 0 : index
    %c0_3 = arith.constant 0 : index
    %4 = vector.load %arg2[%c0_2, %c0_3] : memref<8x256xbf16, #tpu.memory_space<vmem>>, vector<8x256xbf16>
    %c0_4 = arith.constant 0 : index
    %c0_5 = arith.constant 0 : index
    %5 = vector.load %arg3[%c0_4, %c0_5] : memref<256x128xbf16, #tpu.memory_space<vmem>>, vector<256x128xbf16>
    %cst = arith.constant dense<0.000000e+00> : vector<8x128xf32>
    %6 = tpu.matmul %4, %5, %cst {dimension_numbers = #tpu.dot_dimension_numbers<[1], [0], [0], [1], [0, 0, 1, 1], [], []>} : vector<8x256xbf16>, vector<256x128xbf16>, vector<8x128xf32> -> vector<8x128xf32>
    %7 = arith.addf %3, %6 : vector<8x128xf32>
    %c0_6 = arith.constant 0 : index
    %c0_7 = arith.constant 0 : index
    %8 = vector.load %arg6[%c0_6, %c0_7] : memref<8x128xf32, #tpu.memory_space<vmem>>, vector<8x128xf32>
    tpu.vector_store %arg6[%c0_6, %c0_7], %7 {strides = array<i32>} : memref<8x128xf32, #tpu.memory_space<vmem>>, vector<8x128xf32>,
    %c0_i32_8 = arith.constant 0 : i32
    %9 = arith.cmpi eq, %arg1, %c0_i32_8 : i32
    %10 = arith.extui %9 : i1 to i32
    %c0_i32_9 = arith.constant 0 : i32
    %11 = arith.cmpi ne, %10, %c0_i32_9 : i32
    scf.if %11 {
      %c0_10 = arith.constant 0 : index
      %c0_11 = arith.constant 0 : index
      %12 = vector.load %arg6[%c0_10, %c0_11] : memref<8x128xf32, #tpu.memory_space<vmem>>, vector<8x128xf32>
      %c0_12 = arith.constant 0 : index
      %c0_13 = arith.constant 0 : index
      %13 = vector.load %arg4[%c0_12, %c0_13] : memref<1x128xf32, #tpu.memory_space<vmem>>, vector<1x128xf32>
      %14 = vector.broadcast %13 : vector<1x128xf32> to vector<8x128xf32>
      %15 = arith.addf %12, %14 : vector<8x128xf32>
      %c0_14 = arith.constant 0 : index
      %c0_15 = arith.constant 0 : index
      %16 = vector.load %arg5[%c0_14, %c0_15] : memref<8x128xf32, #tpu.memory_space<vmem>>, vector<8x128xf32>
      tpu.vector_store %arg5[%c0_14, %c0_15], %15 {strides = array<i32>} : memref<8x128xf32, #tpu.memory_space<vmem>>, vector<8x128xf32>,
    } else {
    }
    return
  }
  func.func @transform_0(%arg0: i32, %arg1: i32) -> (i32, i32) {
    %c0_i32 = arith.constant 0 : i32
    %c0_i32_0 = arith.constant 0 : i32
    return %c0_i32, %arg1 : i32, i32
  }
  func.func @transform_1(%arg0: i32, %arg1: i32) -> (i32, i32) {
    %c0_i32 = arith.constant 0 : i32
    return %arg1, %arg0 : i32, i32
  }
  func.func @transform_2(%arg0: i32, %arg1: i32) -> (i32, i32) {
    %c0_i32 = arith.constant 0 : i32
    %c0_i32_0 = arith.constant 0 : i32
    return %c0_i32, %arg0 : i32, i32
  }
  func.func @transform_3(%arg0: i32, %arg1: i32) -> (i32, i32) {
    %c0_i32 = arith.constant 0 : i32
    %c0_i32_0 = arith.constant 0 : i32
    return %c0_i32, %arg0 : i32, i32
  }
}

</mosaic_0001>

<bundles_post_ra>
// kernel: brain_network_forward.6
= control target key start
LH: loop header
LB: loop body
LE: loop exit
PB: predicated region body
PF: predicated region fallthrough
CT: control target
= control target key end

     0   :  { %10 = vsyncpa [#allocation4], 0  ;;  %s1282_s0 = inlined_call_operand.vmem [shape: bf16[8,512], index: 0, kind: input, shape index: {}]   ;;  %s1283_s1 = inlined_call_operand.hbm [shape: bf16[512,256], index: 1, kind: input, shape index: {}]   ;;  %s1284_s2 = inlined_call_operand.vmem [shape: f32[1,256], index: 2, kind: input, shape index: {}]   ;;  %s1285_s3 = inlined_call_operand.vmem [shape: f32[1,256], index: 3, kind: input, shape index: {}]   ;;  %s1286_s4 = inlined_call_operand.vmem [shape: f32[1,256], index: 4, kind: input, shape index: {}]   ;;  %s1287_s5 = inlined_call_operand.vmem [shape: bf16[8,256], index: 5, kind: output, shape index: {}]  }
   0x1   :  { %12 = vsyncpa [#allocation4 + $0x1], 0  ;;  %s1145_s18 = smov 0   ;;  %s1147_s19 = smov 0  }
   0x2   :  { %s1149_s20 = smov 0   ;;  %s1151_s21 = smov 0  }
   0x3   :  { %s1153_s22 = smov 0   ;;  %s1155_s23 = smov 0  }
   0x4 LB: > { %s797_s24 = sadd.s32 4294967295, %s1110_s23   ;;  %s30_s25 = sadd.s32 1, %s1106_s22  ;;  %s1110_s23 = sphi %s1155_s23, %s18_s23   ;;  %s1106_s22 = sphi %s1153_s22, %s1294_s22   ;;  %s1102_s21 = sphi %s1151_s21, %s1293_s21   ;;  %s1098_s20 = sphi %s1149_s20, %s1292_s20   ;;  %s1094_s19 = sphi %s1147_s19, %s1291_s19   ;;  %s1090_s18 = sphi %s1145_s18, %s1290_s18  }
   0x5   : > { %p32_p0 = scmp.ge.s32.totalorder %s30_s25, 2  ;;  %s65_s26 = sadd.s32 1, %s1098_s20 }
   0x6   : > { %p72_p1 = scmp.ne.s32.totalorder %s1098_s20, %s1094_s19  ;;  %p73_p2 = scmp.eq.s32.totalorder %s1110_s23, 0 }
   0x7   : > { %s1296_s25 = smov (%p32_p0, %s30_s25), 0  ;;  %p78_p4 = scmp.ne.s32.totalorder %s1094_s19, %s1090_s18 }
   0x8   : > { %p1181_p3 = por %p73_p2, %p72_p1  ;;  %s61_s28 = ssub.s32 %s1106_s22, %s1296_s25 }
   0x9   : > { %p79_p5 = scmp.eq.s32.totalorder %s797_s24, 0  ;;  %p63_p6 = scmp.eq.s32.totalorder %s61_s28, 0 }
   0xa   : > { %p975_p8 = scmp.lt.s32.totalorder %s1110_s23, 2  ;;  %s215_s6 = sand.u32 1, %s1098_s20  }
   0xb   : > { %p1188_p7 = por %p79_p5, %p78_p4  ;;  %s803_s7 = sshll.u32 %s1106_s22, 2 }
   0xc   : > { %s1194_s30 = scalar_select %p63_p6, %s1098_s20, %s65_s26  }
   0xd   : > { %s802_s8 = sshll.u32 %s215_s6, 8  ;;  %s226_s11 = scalar_lea.hbm %s1283_s1, %s803_s7 }
   0xe   : > { %s227_s12 = sshll.u32 %s226_s11, 4  ;;  %s219_s13 = scalar_lea.vmem [#allocation3], %s802_s8  ;;  %s228_s12 = int_to_ptr.hbm [resolvable:$true] %s227_s12 }
   0xf   : > { %s229_s14 = sshll.u32 %s219_s13, 4  ;;  %p972_p9 = pnand %p975_p8, %p1181_p3  ;;  %s230_s14 = int_to_ptr.vmem [resolvable:$true] %s229_s14 }
  0x10   : > { %p804_p10 = scmp.ge.s32.totalorder %s1110_s23, 1  ;;  %s216_s15 = scalar_lea.sflag [#allocation4], %s215_s6 }
  0x11   : > { %s1112_s16 = smov 128   ;;  %s1113_s17 = smov 64  }
  0x12   : > { %s1114_s18 = smov 4   ;;  %p255_p11 = scmp.lt.s32.totalorder %s1110_s23, 3 }
  0x13   : > { %974 = dma.hbm_to_vmem [thread:$0]  (!%p972_p9), %s228_s12, 4096, %s230_s14, %s216_s15, %s1112_s16, %s1113_s17, %s1114_s18  }
  0x14   : > { %p256_p12 = pnand %p804_p10, %p255_p11 }
  0x15   : > { %s261_s24 = sand.u32 (!%p256_p12), 1, %s1094_s19  }
  0x16   : > { %259 = sbr.rel (%p256_p12) target bundleno = 209 (0xd1), region = 40  ;;  %s805_s26 = sshll.u32 (!%p256_p12), %s261_s24, 8 }
  0x17   : > { %s262_s28 = scalar_lea.sflag (!%p256_p12), [#allocation4], %s261_s24  ;;  %s1206_s7 = scalar_lea.vmem (!%p256_p12), [#allocation3], %s805_s26 }
  0x1b   : > { %1085 = dma.done.wait (%p1188_p7), %s262_s28, 4096  }
  0x1c   : > { %1087 = vsyncadd (%p1188_p7), %s262_s28, 4294963200  ;;  %v944_v0 = vld [vmem:[%s1206_s7 + $0x38] sm:$0xff]  ;;  %v943_v4 = vld [vmem:[%s1206_s7 + $0x30] sm:$0xff]  ;;  %p313_p13 = scmp.lt.s32.totalorder %s1102_s21, 1 }
  0x1d   : > { %v952_v1 = vld [vmem:[%s1206_s7 + $0x78] sm:$0xff]  ;;  %604 = vmatpush.bf16.msra.mxu0 %v944_v0  ;;  %v951_v5 = vld [vmem:[%s1206_s7 + $0x70] sm:$0xff]  ;;  %v942_v8 = vld [vmem:[%s1206_s7 + $0x28] sm:$0xff] }
  0x1e   : > { %v960_v2 = vld [vmem:[%s1206_s7 + $0xb8] sm:$0xff]  ;;  %617 = vmatpush.bf16.msra.mxu1 %v952_v1  ;;  %v959_v6 = vld [vmem:[%s1206_s7 + $0xb0] sm:$0xff]  ;;  %v950_v9 = vld [vmem:[%s1206_s7 + $0x68] sm:$0xff]  ;;  %s1298_s21 = smov (!%p313_p13, %s1102_s21), 1 }
  0x1f   : > { %v968_v3 = vld [vmem:[%s1206_s7 + $0xf8] sm:$0xff]  ;;  %630 = vmatpush.bf16.msra.mxu2 %v960_v2  ;;  %v967_v7 = vld [vmem:[%s1206_s7 + $0xf0] sm:$0xff]  ;;  %v958_v10 = vld [vmem:[%s1206_s7 + $0xa8] sm:$0xff]  ;;  %s315_s11 = scalar_lea.vmem %s1284_s2, %s1298_s21  ;;  %s318_s14 = scalar_lea.vmem %s1285_s3, %s1298_s21 }
  0x20   : > { %643 = vmatpush.bf16.msra.mxu3 %v968_v3  ;;  %v966_v11 = vld [vmem:[%s1206_s7 + $0xe8] sm:$0xff]  ;;  %v941_v12 = vld [vmem:[%s1206_s7 + $0x20] sm:$0xff]  ;;  %v940_v16 = vld [vmem:[%s1206_s7 + $0x18] sm:$0xff]  ;;  %s321_s17 = scalar_lea.vmem %s1286_s4, %s1298_s21  ;;  %s806_s18 = sshll.u32 %s1298_s21, 2 }
  0x21   : > { %605 = vmatpush.bf16.msra.mxu0 %v943_v4  ;;  %v949_v13 = vld [vmem:[%s1206_s7 + $0x60] sm:$0xff]  ;;  %v948_v17 = vld [vmem:[%s1206_s7 + $0x58] sm:$0xff]  ;;  %v939_v20 = vld [vmem:[%s1206_s7 + $0x10] sm:$0xff]  ;;  %s325_s28 = scalar_lea.vmem %s1287_s5, %s806_s18 }
  0x22   : > { %618 = vmatpush.bf16.msra.mxu1 %v951_v5  ;;  %v957_v14 = vld [vmem:[%s1206_s7 + $0xa0] sm:$0xff]  ;;  %v956_v18 = vld [vmem:[%s1206_s7 + $0x98] sm:$0xff]  ;;  %v947_v21 = vld [vmem:[%s1206_s7 + $0x50] sm:$0xff] }
  0x23   : > { %631 = vmatpush.bf16.msra.mxu2 %v959_v6  ;;  %v965_v15 = vld [vmem:[%s1206_s7 + $0xe0] sm:$0xff]  ;;  %v964_v19 = vld [vmem:[%s1206_s7 + $0xd8] sm:$0xff]  ;;  %v955_v22 = vld [vmem:[%s1206_s7 + $0x90] sm:$0xff] }
  0x24   : > { %644 = vmatpush.bf16.msra.mxu3 %v967_v7  ;;  %v963_v23 = vld [vmem:[%s1206_s7 + $0xd0] sm:$0xff]  ;;  %v938_v24 = vld [vmem:[%s1206_s7 + $0x8] sm:$0xff]  ;;  %v332_v26 = vld [vmem:[%s1282_s0] sm:$0xff] }
  0x25   : > { %606 = vmatpush.bf16.msra.mxu0 %v942_v8  ;;  %v946_v25 = vld [vmem:[%s1206_s7 + $0x48] sm:$0xff]  ;;  %v400_v30 = vunpack.c.l.b16 %v332_v26  ;;  %v401_v31 = vunpack.c.h.b16 %v332_v26  ;;  %v937_v32 = vld [vmem:[%s1206_s7] sm:$0xff] }
  0x26   : > { %619 = vmatpush.bf16.msra.mxu1 %v950_v9  ;;  %v954_v27 = vld [vmem:[%s1206_s7 + $0x88] sm:$0xff]  ;;  %v945_v33 = vld [vmem:[%s1206_s7 + $0x40] sm:$0xff] }
  0x27   : > { %632 = vmatpush.bf16.msra.mxu2 %v958_v10  ;;  %v962_v28 = vld [vmem:[%s1206_s7 + $0xc8] sm:$0xff]  ;;  %v953_v36 = vld [vmem:[%s1206_s7 + $0x80] sm:$0xff]  ;;  %v404_v38 = vpack.c.b16 %v400_v30, %v400_v30  ;;  %v405_v39 = vpack.c.b16 %v401_v31, %v401_v31 }
  0x28   : > { %645 = vmatpush.bf16.msra.mxu3 %v966_v11  ;;  %v333_v29 = vld [vmem:[%s1282_s0 + $0x8] sm:$0xff]  ;;  %v961_v37 = vld [vmem:[%s1206_s7 + $0xc0] sm:$0xff] }
  0x29   : > { %607 = vmatpush.bf16.msra.mxu0 %v941_v12  ;;  %v402_v34 = vunpack.c.l.b16 %v333_v29  ;;  %v403_v35 = vunpack.c.h.b16 %v333_v29  ;;  %v1027_v48 = vld [vmem:[%s315_s11] ss:$0 sm:$0xff] }
  0x2a   : > { %620 = vmatpush.bf16.msra.mxu1 %v949_v13  ;;  %v1028_v53 = vld [vmem:[%s318_s14] ss:$0 sm:$0xff] }
  0x2b   : > { %633 = vmatpush.bf16.msra.mxu2 %v957_v14  ;;  %v406_v40 = vpack.c.b16 %v402_v34, %v402_v34  ;;  %v407_v41 = vpack.c.b16 %v403_v35, %v403_v35  ;;  %v1029_v55 = vld [vmem:[%s321_s17] ss:$0 sm:$0xff] }
  0x2c   : > { %646 = vmatpush.bf16.msra.mxu3 %v965_v15 }
  0x2d   : > { %608 = vmatpush.bf16.msra.mxu0 %v940_v16 }
  0x2e   : > { %621 = vmatpush.bf16.msra.mxu1 %v948_v17 }
  0x2f   : > { %634 = vmatpush.bf16.msra.mxu2 %v956_v18 }
  0x30   : > { %647 = vmatpush.bf16.msra.mxu3 %v964_v19 }
  0x31   : > { %609 = vmatpush.bf16.msra.mxu0 %v939_v20 }
  0x32   : > { %622 = vmatpush.bf16.msra.mxu1 %v947_v21 }
  0x33   : > { %635 = vmatpush.bf16.msra.mxu2 %v955_v22 }
  0x34   : > { %648 = vmatpush.bf16.msra.mxu3 %v963_v23 }
  0x35   : > { %610 = vmatpush.bf16.msra.mxu0 %v938_v24 }
  0x36   : > { %623 = vmatpush.bf16.msra.mxu1 %v946_v25 }
  0x37   : > { %636 = vmatpush.bf16.msra.mxu2 %v954_v27 }
  0x38   : > { %649 = vmatpush.bf16.msra.mxu3 %v962_v28 }
  0x39   : > { %611 = vmatpush.bf16.msra.mxu0 %v937_v32 }
  0x3a   : > { %624 = vmatpush.bf16.msra.mxu1 %v945_v33 }
  0x3b   : > { %637 = vmatpush.bf16.msra.mxu2 %v953_v36 }
  0x3c   : > { %650 = vmatpush.bf16.msra.mxu3 %v961_v37  ;;  %612 = vmatmul.bf16.vlgmr.msra.gmra.mxu0 %v404_v38 }
  0x3d   : > { %625 = vmatmul.bf16.vlgmr.msra.gmra.mxu1 %v405_v39 }
  0x3e   : > { %638 = vmatmul.bf16.vlgmr.msra.gmra.mxu2 %v406_v40 }
  0x3f   : > { %651 = vmatmul.bf16.vlgmr.msra.gmra.mxu3 %v407_v41 }
  0xb9   : > { %v613_v42 = vpop.f32.mrf.mxu0 }
  0xba   : > { %v626_v43 = vpop.f32.mrf.mxu1 }
  0xbb   : > { %v627_v44 = vadd.f32 %v626_v43, %v613_v42 }
  0xc1   : > { %v639_v45 = vpop.f32.mrf.mxu2  ;;  %v615_v49 = vpop.f32.mrf.mxu0 }
  0xc2   : > { %v652_v46 = vpop.f32.mrf.mxu3  ;;  %v640_v47 = vadd.f32 %v639_v45, %v627_v44  ;;  %v628_v50 = vpop.f32.mrf.mxu1 }
  0xc4   : > { %v653_v51 = vadd.f32 %v652_v46, %v640_v47 }
  0xc6   : > { %v666_v52 = vadd.f32 %v1027_v48, %v653_v51 }
  0xc8   : > { %v667_v54 = vmax.f32 %v666_v52, 0.0 }
  0xc9   : > { %v641_v56 = vpop.f32.mrf.mxu2 }
  0xca   : > { %v654_v57 = vpop.f32.mrf.mxu3  ;;  %v672_v58 = vmul.f32 %v1028_v53, %v667_v54 }
  0xcc   : > { %v677_v59 = vadd.f32 %v1029_v55, %v672_v58 }
  0xce   : > { %v678_v60 = vpack.c.bf16 %v677_v59, %v677_v59 }
  0xd0   : > { %679 = vst [vmem:[%s325_s28] sm:$0xf] %v678_v60 }
  0xd1 PF: > { %s18_s23 = sadd.s32 1, %s1110_s23   ;;  %s1290_s18 = smov %s1094_s19 }
  0xd2   : > { %p15_p0 = scmp.ge.s32.totalorder %s18_s23, 4   ;;  %s1291_s19 = smov %s1098_s20 }
  0xd3   : > { %s1292_s20 = smov %s1194_s30  ;;  %s1293_s21 = smov %s1106_s22 }
  0xd4   : > { %s1294_s22 = smov %s1296_s25  ;;  %17 = sbr.rel (!%p15_p0) target bundleno = 4 (0x4), region = 100 }
  0xd9   :  { %699 = vsyncpa [#allocation4], 1 }
  0xda   :  { %701 = vsyncpa [#allocation4 + $0x1], 1 }

// kernel: brain_network_forward.11
= control target key start
LH: loop header
LB: loop body
LE: loop exit
PB: predicated region body
PF: predicated region fallthrough
CT: control target
= control target key end

     0   :  { %s356_s1 = inlined_call_operand.vmem [shape: bf16[256,128], index: 1, kind: input, shape index: {}]   ;;  %s357_s0 = inlined_call_operand.vmem [shape: bf16[8,256], index: 0, kind: input, shape index: {}]   ;;  %s358_s2 = inlined_call_operand.vmem [shape: f32[1,128], index: 2, kind: input, shape index: {}]   ;;  %s359_s3 = inlined_call_operand.vmem [shape: f32[8,128], index: 3, kind: output, shape index: {}]  }
   0x1   :  { %v269_v0 = vld [vmem:[%s356_s1 + $0x38] sm:$0xff]  ;;  %v268_v2 = vld [vmem:[%s356_s1 + $0x30] sm:$0xff]  ;;  %v267_v4 = vld [vmem:[%s356_s1 + $0x28] sm:$0xff] }
   0x2   :  { %v277_v1 = vld [vmem:[%s356_s1 + $0x78] sm:$0xff]  ;;  %156 = vmatpush.bf16.msra.mxu0 %v269_v0  ;;  %v276_v3 = vld [vmem:[%s356_s1 + $0x70] sm:$0xff]  ;;  %v275_v5 = vld [vmem:[%s356_s1 + $0x68] sm:$0xff] }
   0x3   :  { %169 = vmatpush.bf16.msra.mxu1 %v277_v1  ;;  %v266_v6 = vld [vmem:[%s356_s1 + $0x20] sm:$0xff]  ;;  %v265_v8 = vld [vmem:[%s356_s1 + $0x18] sm:$0xff]  ;;  %v264_v10 = vld [vmem:[%s356_s1 + $0x10] sm:$0xff] }
   0x4   :  { %v274_v7 = vld [vmem:[%s356_s1 + $0x60] sm:$0xff]  ;;  %v273_v9 = vld [vmem:[%s356_s1 + $0x58] sm:$0xff]  ;;  %v272_v11 = vld [vmem:[%s356_s1 + $0x50] sm:$0xff] }
   0x5   :  { %v263_v12 = vld [vmem:[%s356_s1 + $0x8] sm:$0xff]  ;;  %v20_v14 = vld [vmem:[%s357_s0] sm:$0xff] }
   0x6   :  { %157 = vmatpush.bf16.msra.mxu0 %v268_v2  ;;  %v271_v13 = vld [vmem:[%s356_s1 + $0x48] sm:$0xff]  ;;  %v54_v15 = vunpack.c.l.b16 %v20_v14  ;;  %v55_v16 = vunpack.c.h.b16 %v20_v14  ;;  %v262_v17 = vld [vmem:[%s356_s1] sm:$0xff] }
   0x7   :  { %170 = vmatpush.bf16.msra.mxu1 %v276_v3  ;;  %v270_v18 = vld [vmem:[%s356_s1 + $0x40] sm:$0xff] }
   0x8   :  { %v56_v19 = vpack.c.b16 %v54_v15, %v54_v15  ;;  %v57_v20 = vpack.c.b16 %v55_v16, %v55_v16  ;;  %v278_v21 = vld [vmem:[%s358_s2] ss:$0 sm:$0xff] }
   0xa   :  { %158 = vmatpush.bf16.msra.mxu0 %v267_v4 }
   0xb   :  { %171 = vmatpush.bf16.msra.mxu1 %v275_v5 }
   0xe   :  { %159 = vmatpush.bf16.msra.mxu0 %v266_v6 }
   0xf   :  { %172 = vmatpush.bf16.msra.mxu1 %v274_v7 }
  0x12   :  { %160 = vmatpush.bf16.msra.mxu0 %v265_v8 }
  0x13   :  { %173 = vmatpush.bf16.msra.mxu1 %v273_v9 }
  0x16   :  { %161 = vmatpush.bf16.msra.mxu0 %v264_v10 }
  0x17   :  { %174 = vmatpush.bf16.msra.mxu1 %v272_v11 }
  0x1a   :  { %162 = vmatpush.bf16.msra.mxu0 %v263_v12 }
  0x1b   :  { %175 = vmatpush.bf16.msra.mxu1 %v271_v13 }
  0x1e   :  { %163 = vmatpush.bf16.msra.mxu0 %v262_v17 }
  0x1f   :  { %176 = vmatpush.bf16.msra.mxu1 %v270_v18 }
  0x21   :  { %164 = vmatmul.bf16.vlgmr.msra.gmra.mxu0 %v56_v19 }
  0x22   :  { %177 = vmatmul.bf16.vlgmr.msra.gmra.mxu1 %v57_v20 }
  0x9e   :  { %v165_v22 = vpop.f32.mrf.mxu0 }
  0x9f   :  { %v178_v23 = vpop.f32.mrf.mxu1 }
  0xa0   :  { %v179_v24 = vadd.f32 %v178_v23, %v165_v22 }
  0xa2   :  { %v192_v25 = vadd.f32 %v278_v21, %v179_v24 }
  0xa4   :  { %193 = vst [vmem:[%s359_s3] sm:$0xff] %v192_v25 }
  0xa6   :  { %v167_v26 = vpop.f32.mrf.mxu0 }
  0xa7   :  { %v180_v27 = vpop.f32.mrf.mxu1 }

// kernel: brain_network_forward.7
= control target key start
LH: loop header
LB: loop body
LE: loop exit
PB: predicated region body
PF: predicated region fallthrough
CT: control target
= control target key end

     0   :  { %s1046_s21 = smov 0   ;;  %s1048_s22 = smov 0   ;;  %s1213_s0 = inlined_call_operand.vmem [shape: bf16[8,256], index: 0, kind: input, shape index: {}, may-alias: {0,5}]   ;;  %s1214_s1 = inlined_call_operand.vmem [shape: bf16[256,256], index: 1, kind: input, shape index: {}]   ;;  %s1215_s2 = inlined_call_operand.vmem [shape: f32[1,256], index: 2, kind: input, shape index: {}]   ;;  %s1216_s3 = inlined_call_operand.vmem [shape: f32[1,256], index: 3, kind: input, shape index: {}]   ;;  %s1217_s4 = inlined_call_operand.vmem [shape: f32[1,256], index: 4, kind: input, shape index: {}]   ;;  %s1218_s5 = inlined_call_operand.vmem [shape: bf16[8,256], index: 5, kind: input, shape index: {}, may-alias: {0,5}]   ;;  %s1219_s6 = inlined_call_operand.vmem [shape: bf16[8,256], index: 6, kind: output, shape index: {}]  }
   0x1   :  { %s1050_s23 = smov 0   ;;  %s1052_s24 = smov 0  }
   0x2   :  { %s1054_s25 = smov 0  }
   0x3 LB: > { %s28_s26 = sadd.s32 1, %s1005_s24  ;;  %p70_p1 = scmp.ne.s32.totalorder %s997_s22, %s993_s21  ;;  %s1009_s25 = sphi %s1054_s25, %s16_s25   ;;  %s1005_s24 = sphi %s1052_s24, %s1223_s24   ;;  %s1001_s23 = sphi %s1050_s23, %s1222_s23   ;;  %s997_s22 = sphi %s1048_s22, %s1221_s22   ;;  %s993_s21 = sphi %s1046_s21, %s1220_s21  }
   0x4   : > { %p30_p0 = scmp.ge.s32.totalorder %s28_s26, 2  ;;  %p71_p2 = scmp.eq.s32.totalorder %s1009_s25, 0 }
   0x5   : > { %s63_s28 = sadd.s32 1, %s997_s22  ;;  %p839_p5 = scmp.ge.s32.totalorder %s1009_s25, 2 }
   0x6   : > { %s1225_s26 = smov (%p30_p0, %s28_s26), 0  ;;  %p72_p3 = por %p71_p2, %p70_p1 }
   0x7   : > { %s59_s27 = ssub.s32 %s1005_s24, %s1225_s26  ;;  %235 = sbr.rel (%p839_p5) target bundleno = 48 (0x30), region = 20 }
   0x8   : > { %p61_p4 = scmp.eq.s32.totalorder %s59_s27, 0 }
   0xa   : > { %s1081_s29 = scalar_select %p61_p4, %s997_s22, %s63_s28  }
   0xc   : > { %238 = sbr.rel (!%p72_p3) target bundleno = 48 (0x30), region = 24  ;;  %s240_s30 = sand.u32 (%p72_p3), 1, %s997_s22  }
   0xd   : > { %s841_s7 = sshll.u32 (%p72_p3), %s1005_s24, 2  ;;  %s840_s8 = sshll.u32 (%p72_p3), %s240_s30, 7 }
   0xe   : > { %s1089_s11 = scalar_lea.vmem (%p72_p3), %s1214_s1, %s841_s7  ;;  %s1093_s12 = scalar_lea.vmem (%p72_p3), [#allocation3], %s840_s8 }
   0xf   : > { %v264_v0 = vld [vmem:[%s1089_s11] sm:$0xf] (%p72_p3)  ;;  %v266_v1 = vld [vmem:[%s1089_s11 + $0x8] sm:$0xf] (%p72_p3)  ;;  %v268_v2 = vld [vmem:[%s1089_s11 + $0x10] sm:$0xf] (%p72_p3) }
  0x10   : > { %265 = vst [vmem:[%s1093_s12] sm:$0xf] (%p72_p3), %v264_v0  ;;  %v270_v3 = vld [vmem:[%s1089_s11 + $0x18] sm:$0xf] (%p72_p3)  ;;  %v272_v4 = vld [vmem:[%s1089_s11 + $0x20] sm:$0xf] (%p72_p3) }
  0x11   : > { %267 = vst [vmem:[%s1093_s12 + $0x4] sm:$0xf] %v266_v1  ;;  %v274_v5 = vld [vmem:[%s1089_s11 + $0x28] sm:$0xf]  ;;  %v276_v6 = vld [vmem:[%s1089_s11 + $0x30] sm:$0xf] }
  0x12   : > { %269 = vst [vmem:[%s1093_s12 + $0x8] sm:$0xf] %v268_v2  ;;  %v278_v7 = vld [vmem:[%s1089_s11 + $0x38] sm:$0xf]  ;;  %v280_v8 = vld [vmem:[%s1089_s11 + $0x40] sm:$0xf] }
  0x13   : > { %271 = vst [vmem:[%s1093_s12 + $0xc] sm:$0xf] %v270_v3  ;;  %v282_v9 = vld [vmem:[%s1089_s11 + $0x48] sm:$0xf]  ;;  %v284_v10 = vld [vmem:[%s1089_s11 + $0x50] sm:$0xf] }
  0x14   : > { %273 = vst [vmem:[%s1093_s12 + $0x10] sm:$0xf] %v272_v4  ;;  %v286_v11 = vld [vmem:[%s1089_s11 + $0x58] sm:$0xf]  ;;  %v288_v12 = vld [vmem:[%s1089_s11 + $0x60] sm:$0xf] }
  0x15   : > { %275 = vst [vmem:[%s1093_s12 + $0x14] sm:$0xf] %v274_v5  ;;  %v290_v13 = vld [vmem:[%s1089_s11 + $0x68] sm:$0xf]  ;;  %v292_v14 = vld [vmem:[%s1089_s11 + $0x70] sm:$0xf] }
  0x16   : > { %277 = vst [vmem:[%s1093_s12 + $0x18] sm:$0xf] %v276_v6  ;;  %v294_v15 = vld [vmem:[%s1089_s11 + $0x78] sm:$0xf]  ;;  %v296_v16 = vld [vmem:[%s1089_s11 + $0x80] sm:$0xf] }
  0x17   : > { %279 = vst [vmem:[%s1093_s12 + $0x1c] sm:$0xf] %v278_v7  ;;  %v298_v17 = vld [vmem:[%s1089_s11 + $0x88] sm:$0xf]  ;;  %v300_v18 = vld [vmem:[%s1089_s11 + $0x90] sm:$0xf] }
  0x18   : > { %281 = vst [vmem:[%s1093_s12 + $0x20] sm:$0xf] %v280_v8  ;;  %v302_v19 = vld [vmem:[%s1089_s11 + $0x98] sm:$0xf]  ;;  %v304_v20 = vld [vmem:[%s1089_s11 + $0xa0] sm:$0xf] }
  0x19   : > { %283 = vst [vmem:[%s1093_s12 + $0x24] sm:$0xf] %v282_v9  ;;  %v306_v21 = vld [vmem:[%s1089_s11 + $0xa8] sm:$0xf]  ;;  %v308_v22 = vld [vmem:[%s1089_s11 + $0xb0] sm:$0xf] }
  0x1a   : > { %285 = vst [vmem:[%s1093_s12 + $0x28] sm:$0xf] %v284_v10  ;;  %v310_v23 = vld [vmem:[%s1089_s11 + $0xb8] sm:$0xf]  ;;  %v312_v24 = vld [vmem:[%s1089_s11 + $0xc0] sm:$0xf] }
  0x1b   : > { %287 = vst [vmem:[%s1093_s12 + $0x2c] sm:$0xf] %v286_v11  ;;  %v314_v25 = vld [vmem:[%s1089_s11 + $0xc8] sm:$0xf]  ;;  %v316_v26 = vld [vmem:[%s1089_s11 + $0xd0] sm:$0xf] }
  0x1c   : > { %289 = vst [vmem:[%s1093_s12 + $0x30] sm:$0xf] %v288_v12  ;;  %v318_v27 = vld [vmem:[%s1089_s11 + $0xd8] sm:$0xf]  ;;  %v320_v28 = vld [vmem:[%s1089_s11 + $0xe0] sm:$0xf] }
  0x1d   : > { %291 = vst [vmem:[%s1093_s12 + $0x34] sm:$0xf] %v290_v13  ;;  %v322_v29 = vld [vmem:[%s1089_s11 + $0xe8] sm:$0xf]  ;;  %v324_v30 = vld [vmem:[%s1089_s11 + $0xf0] sm:$0xf] }
  0x1e   : > { %293 = vst [vmem:[%s1093_s12 + $0x38] sm:$0xf] %v292_v14  ;;  %v326_v31 = vld [vmem:[%s1089_s11 + $0xf8] sm:$0xf] }
  0x1f   : > { %295 = vst [vmem:[%s1093_s12 + $0x3c] sm:$0xf] %v294_v15 }
  0x20   : > { %297 = vst [vmem:[%s1093_s12 + $0x40] sm:$0xf] %v296_v16 }
  0x21   : > { %299 = vst [vmem:[%s1093_s12 + $0x44] sm:$0xf] %v298_v17 }
  0x22   : > { %301 = vst [vmem:[%s1093_s12 + $0x48] sm:$0xf] %v300_v18 }
  0x23   : > { %303 = vst [vmem:[%s1093_s12 + $0x4c] sm:$0xf] %v302_v19 }
  0x24   : > { %305 = vst [vmem:[%s1093_s12 + $0x50] sm:$0xf] %v304_v20 }
  0x25   : > { %307 = vst [vmem:[%s1093_s12 + $0x54] sm:$0xf] %v306_v21 }
  0x26   : > { %309 = vst [vmem:[%s1093_s12 + $0x58] sm:$0xf] %v308_v22 }
  0x27   : > { %311 = vst [vmem:[%s1093_s12 + $0x5c] sm:$0xf] %v310_v23 }
  0x28   : > { %313 = vst [vmem:[%s1093_s12 + $0x60] sm:$0xf] %v312_v24 }
  0x29   : > { %315 = vst [vmem:[%s1093_s12 + $0x64] sm:$0xf] %v314_v25 }
  0x2a   : > { %317 = vst [vmem:[%s1093_s12 + $0x68] sm:$0xf] %v316_v26 }
  0x2b   : > { %319 = vst [vmem:[%s1093_s12 + $0x6c] sm:$0xf] %v318_v27 }
  0x2c   : > { %321 = vst [vmem:[%s1093_s12 + $0x70] sm:$0xf] %v320_v28 }
  0x2d   : > { %323 = vst [vmem:[%s1093_s12 + $0x74] sm:$0xf] %v322_v29 }
  0x2e   : > { %325 = vst [vmem:[%s1093_s12 + $0x78] sm:$0xf] %v324_v30 }
  0x2f   : > { %327 = vst [vmem:[%s1093_s12 + $0x7c] sm:$0xf] %v326_v31 }
  0x30 PF: > { %p842_p6 = scmp.ge.s32.totalorder %s1009_s25, 1  ;;  %p439_p7 = scmp.lt.s32.totalorder %s1009_s25, 3 }
  0x32   : > { %p440_p8 = pnand %p842_p6, %p439_p7 }
  0x33   : > { %s446_s13 = sand.u32 (!%p440_p8), 1, %s993_s21   ;;  %p499_p9 = scmp.lt.s32.totalorder (!%p440_p8), %s1001_s23, 1 }
  0x34   : > { %443 = sbr.rel (%p440_p8) target bundleno = 231 (0xe7), region = 81  ;;  %s843_s14 = sshll.u32 (!%p440_p8), %s446_s13, 7 }
  0x35   : > { %s1160_s15 = scalar_lea.vmem (!%p440_p8), [#allocation3], %s843_s14 }
  0x39   : > { %v919_v32 = vld [vmem:[%s1160_s15 + $0x38] sm:$0xff]  ;;  %v918_v34 = vld [vmem:[%s1160_s15 + $0x30] sm:$0xff]  ;;  %v917_v36 = vld [vmem:[%s1160_s15 + $0x28] sm:$0xff]  ;;  %s1227_s23 = smov (!%p499_p9, %s1001_s23), 1 }
  0x3a   : > { %v927_v33 = vld [vmem:[%s1160_s15 + $0x78] sm:$0xff]  ;;  %658 = vmatpush.bf16.msra.mxu0 %v919_v32  ;;  %v926_v35 = vld [vmem:[%s1160_s15 + $0x70] sm:$0xff]  ;;  %v925_v37 = vld [vmem:[%s1160_s15 + $0x68] sm:$0xff]  ;;  %s501_s20 = scalar_lea.vmem %s1215_s2, %s1227_s23  ;;  %s504_s28 = scalar_lea.vmem %s1216_s3, %s1227_s23 }
  0x3b   : > { %671 = vmatpush.bf16.msra.mxu1 %v927_v33  ;;  %v916_v38 = vld [vmem:[%s1160_s15 + $0x20] sm:$0xff]  ;;  %v915_v40 = vld [vmem:[%s1160_s15 + $0x18] sm:$0xff]  ;;  %v914_v42 = vld [vmem:[%s1160_s15 + $0x10] sm:$0xff]  ;;  %s507_s8 = scalar_lea.vmem %s1217_s4, %s1227_s23  ;;  %s844_s9 = sshll.u32 %s1227_s23, 2 }
  0x3c   : > { %v924_v39 = vld [vmem:[%s1160_s15 + $0x60] sm:$0xff]  ;;  %v923_v41 = vld [vmem:[%s1160_s15 + $0x58] sm:$0xff]  ;;  %v922_v43 = vld [vmem:[%s1160_s15 + $0x50] sm:$0xff]  ;;  %s511_s12 = scalar_lea.vmem %s1218_s5, %s844_s9  ;;  %s515_s14 = scalar_lea.vmem %s1219_s6, %s844_s9 }
  0x3d   : > { %v913_v44 = vld [vmem:[%s1160_s15 + $0x8] sm:$0xff]  ;;  %v522_v46 = vld [vmem:[%s1213_s0] sm:$0xff] }
  0x3e   : > { %659 = vmatpush.bf16.msra.mxu0 %v918_v34  ;;  %v921_v45 = vld [vmem:[%s1160_s15 + $0x48] sm:$0xff]  ;;  %v556_v47 = vunpack.c.l.b16 %v522_v46  ;;  %v557_v48 = vunpack.c.h.b16 %v522_v46  ;;  %v912_v49 = vld [vmem:[%s1160_s15] sm:$0xff] }
  0x3f   : > { %672 = vmatpush.bf16.msra.mxu1 %v926_v35  ;;  %v920_v50 = vld [vmem:[%s1160_s15 + $0x40] sm:$0xff] }
  0x40   : > { %v558_v51 = vpack.c.b16 %v556_v47, %v556_v47  ;;  %v559_v52 = vpack.c.b16 %v557_v48, %v557_v48  ;;  %v968_v53 = vld [vmem:[%s501_s20] ss:$0 sm:$0xff] }
  0x41   : > { %v969_v58 = vld [vmem:[%s504_s28] ss:$0 sm:$0xff] }
  0x42   : > { %660 = vmatpush.bf16.msra.mxu0 %v917_v36  ;;  %v706_v59 = vld [vmem:[%s511_s12] sm:$0xf] }
  0x43   : > { %673 = vmatpush.bf16.msra.mxu1 %v925_v37  ;;  %v970_v61 = vld [vmem:[%s507_s8] ss:$0 sm:$0xff]  ;;  %v707_v63 = vunpack.c.l.bf16 %v706_v59 }
  0x46   : > { %661 = vmatpush.bf16.msra.mxu0 %v916_v38 }
  0x47   : > { %674 = vmatpush.bf16.msra.mxu1 %v924_v39 }
  0x4a   : > { %662 = vmatpush.bf16.msra.mxu0 %v915_v40 }
  0x4b   : > { %675 = vmatpush.bf16.msra.mxu1 %v923_v41 }
  0x4e   : > { %663 = vmatpush.bf16.msra.mxu0 %v914_v42 }
  0x4f   : > { %676 = vmatpush.bf16.msra.mxu1 %v922_v43 }
  0x52   : > { %664 = vmatpush.bf16.msra.mxu0 %v913_v44 }
  0x53   : > { %677 = vmatpush.bf16.msra.mxu1 %v921_v45 }
  0x56   : > { %665 = vmatpush.bf16.msra.mxu0 %v912_v49 }
  0x57   : > { %678 = vmatpush.bf16.msra.mxu1 %v920_v50 }
  0x59   : > { %666 = vmatmul.bf16.vlgmr.msra.gmra.mxu0 %v558_v51 }
  0x5a   : > { %679 = vmatmul.bf16.vlgmr.msra.gmra.mxu1 %v559_v52 }
  0xd6   : > { %v667_v54 = vpop.f32.mrf.mxu0 }
  0xd7   : > { %v680_v55 = vpop.f32.mrf.mxu1 }
  0xd8   : > { %v681_v56 = vadd.f32 %v680_v55, %v667_v54 }
  0xda   : > { %v694_v57 = vadd.f32 %v968_v53, %v681_v56 }
  0xdc   : > { %v695_v60 = vmax.f32 %v694_v57, 0.0 }
  0xde   : > { %v700_v62 = vmul.f32 %v969_v58, %v695_v60  ;;  %v669_v0 = vpop.f32.mrf.mxu0 }
  0xdf   : > { %v682_v1 = vpop.f32.mrf.mxu1 }
  0xe0   : > { %v705_v2 = vadd.f32 %v970_v61, %v700_v62 }
  0xe2   : > { %v708_v3 = vadd.f32 %v707_v63, %v705_v2 }
  0xe4   : > { %v709_v4 = vpack.c.bf16 %v708_v3, %v708_v3 }
  0xe6   : > { %710 = vst [vmem:[%s515_s14] sm:$0xf] %v709_v4 }
  0xe7 PF: > { %s16_s25 = sadd.s32 1, %s1009_s25   ;;  %s1220_s21 = smov %s997_s22 }
  0xe8   : > { %p13_p10 = scmp.ge.s32.totalorder %s16_s25, 4   ;;  %s1221_s22 = smov %s1081_s29 }
  0xe9   : > { %s1222_s23 = smov %s1005_s24  ;;  %s1223_s24 = smov %s1225_s26 }
  0xea   :  { %15 = sbr.rel (!%p13_p10) target bundleno = 3 (0x3), region = 143 }

</bundles_post_ra>
